<compile_context>
chip_gen: v5e
topology: v5e:2x2
jax: 0.10.0
libtpu: 0.0.40
codegen_flags: <defaults>
</compile_context>

<pallas_src>
import functools

import jax
import jax.numpy as jnp
from jax.experimental import pallas as pl
from jax.experimental.pallas import tpu as pltpu


# ---------------------------------------------------------------------------
# generation-aware VMEM limit (review opts #3 / #9)
# ---------------------------------------------------------------------------
def _vmem_limit_bytes():
    try:
        cap = pltpu.get_tpu_info().vmem_capacity_bytes
    except Exception:
        return 48 * 1024 * 1024          # safe on every generation
    # v7x: 64 MiB physical -> 48 MiB; v5e/v6e: 128 MiB physical -> 96 MiB
    return int(min(cap * 3 // 4, 96 * 1024 * 1024))


# ---------------------------------------------------------------------------
# FUSED path: kernel emits the final NCHW layout (no post-kernel transpose)
# ---------------------------------------------------------------------------
def _fused_kernel(x_ref, l_ref, f0_ref, f1_ref, b_ref, o_ref):
    # x_ref : (nb, C_in*H, W)      nb whole images per grid step
    # l_ref : (2*S, C_in*H)        S = C_out*2H; rows = (kj, oc, 2i+ki)
    # f0/f1 : (W, 2W)              column spread onto even / odd output columns
    # b_ref : (S, 1)  f32          per-output-row bias
    # o_ref : (nb, S, 2W)          == out[n].reshape(C_out*2H, 2W)  (final layout)
    s_half = l_ref.shape[0] // 2
    lmat = l_ref[...]
    f0 = f0_ref[...]
    f1 = f1_ref[...]
    bcol = b_ref[...]
    nb = x_ref.shape[0]
    for b in range(nb):                                  # static unroll, nb is small
        xb = x_ref[b].astype(jnp.float32)                # single widening cast per image
        y = jnp.dot(lmat, xb, preferred_element_type=jnp.float32)        # (2S, W)
        o = (jnp.dot(y[:s_half], f0, preferred_element_type=jnp.float32)
             + jnp.dot(y[s_half:], f1, preferred_element_type=jnp.float32)
             + bcol)                                                      # (S, 2W)
        o_ref[b] = o.astype(o_ref.dtype)


def _fused_ok(n, c_in, c_out, h, w, itemsize):
    """Shapes for which the fused kernel stays memory-bound and fits VMEM."""
    s = 2 * h * c_out
    if s % 8:                                   # aligned kj-half slice / clean sublane tiles
        return False
    # resident f32 operands: L (2S x C_in*H), F0/F1 (W x 2W), bias
    resident = (2 * s * c_in * h + 4 * w * w + s) * 4
    if resident > 8 * 1024 * 1024:
        return False
    # one image's streamed (in + out) block, double-buffered by the pipeline
    per_image = (c_in * h * w + 4 * c_out * h * w) * itemsize
    if 2 * per_image > 16 * 1024 * 1024:
        return False
    # MXU FLOPs per output element; keep well inside the mem-bound slack on v5e/v6e/v7x
    if 2 * c_in * h + 4 * w > 2048:
        return False
    return True


def _pick_nb(n, per_image_bytes):
    """Images per grid step: amortize the ~0.35us step cost (review opt #5) while keeping
    >= 2 grid steps so both v7x TensorCores are busy (review opt #4)."""
    budget = 8 * 1024 * 1024
    best = 1
    for nb in range(1, n + 1):
        if n % nb:
            continue
        if nb * per_image_bytes > budget:
            continue
        if n >= 2 and n // nb < 2:
            continue
        best = nb
    return best


def _upsample_fused(x, weight, bias, *, vmem_limit):
    n, c_in, h, w = x.shape
    c_out = weight.shape[1]
    s = 2 * h * c_out                      # output rows per image in the flattened view
    k = c_in * h                           # contraction depth of the main matmul
    f32 = jnp.float32

    # L[(kj, oc, s_row), (c, i)] = weight[c, oc, s_row % 2, kj] * (i == s_row // 2)
    wperm = jnp.transpose(weight.astype(f32), (3, 1, 2, 0))      # (kj, oc, ki, c)
    wpart = jnp.tile(wperm, (1, 1, h, 1))                        # (kj, oc, 2H, c): ki pattern
    dup = (jnp.arange(2 * h)[:, None] // 2
           == jnp.arange(h)[None, :]).astype(f32)                # (2H, H) row duplication
    lmat = (wpart[:, :, :, :, None] * dup[None, None, :, None, :]).reshape(2 * s, k)

    jj = jnp.arange(w)
    tt = jnp.arange(2 * w)
    f0 = (tt[None, :] == (2 * jj)[:, None]).astype(f32)          # (W, 2W): even columns
    f1 = (tt[None, :] == (2 * jj + 1)[:, None]).astype(f32)      # (W, 2W): odd columns
    b_col = jnp.repeat(bias.astype(f32), 2 * h)[:, None]         # (S, 1)

    xv = x.reshape(n, k, w)                                      # pure view of NCHW
    itemsize = jnp.dtype(x.dtype).itemsize
    nb = _pick_nb(n, (c_in * h * w + 4 * c_out * h * w) * itemsize)

    out_flat = pl.pallas_call(
        _fused_kernel,
        out_shape=jax.ShapeDtypeStruct((n, s, 2 * w), x.dtype),
        grid_spec=pltpu.PrefetchScalarGridSpec(
            num_scalar_prefetch=0,
            grid=(n // nb,),
            in_specs=[
                pl.BlockSpec((nb, k, w), lambda i: (i, 0, 0)),       # streamed images
                pl.BlockSpec((2 * s, k), lambda i: (0, 0)),          # resident L
                pl.BlockSpec((w, 2 * w), lambda i: (0, 0)),          # resident F0
                pl.BlockSpec((w, 2 * w), lambda i: (0, 0)),          # resident F1
                pl.BlockSpec((s, 1), lambda i: (0, 0)),              # resident bias
            ],
            out_specs=pl.BlockSpec((nb, s, 2 * w), lambda i: (i, 0, 0)),
        ),
        compiler_params=pltpu.CompilerParams(
            dimension_semantics=("parallel",),                       # megacore-shardable
            vmem_limit_bytes=vmem_limit,
        ),
    )(xv, lmat, f0, f1, b_col)

    # Pure reshape (splits (oc, 2i+ki) back apart) -- no transpose, no extra HBM pass.
    return out_flat.reshape(n, c_out, 2 * h, 2 * w)


# ---------------------------------------------------------------------------
# UNFUSED fallback (v2 kernel, simplified + retuned)
# ---------------------------------------------------------------------------
def _tconv_flat_kernel(x_ref, w_ref, b_ref, o_ref):
    # x_ref: (1, C_in, TM)  pixels on the lane axis
    # w_ref: (4*C_out, C_in) resident; (R, C_in) is the MXU-native orientation (no vxpose)
    # b_ref: (4*C_out, 1) f32
    # o_ref: (1, 4*C_out, TM) lane-dense
    acc = jnp.dot(w_ref[...], x_ref[0], preferred_element_type=jnp.float32)
    o_ref[0] = (acc + b_ref[...]).astype(o_ref.dtype)


def _pick_tile_m(hw, n, c_in, r, itemsize, vmem_limit):
    """Pixel-tile size (lane axis). Cap raised to 16384 (review opt #2)."""
    budget = min(vmem_limit // 2, 24 * 1024 * 1024)
    per_col = 2 * (c_in + r) * itemsize              # double-buffered in+out column
    max_tm = max(128, budget // per_col)
    cap = 16384
    if hw <= max_tm:
        if n >= 2 or hw <= 128:
            return hw                                # whole image per block
        # N == 1: force >= 2 pixel tiles so both v7x cores get work (review opt #4)
        half = -(-((hw + 1) // 2) // 128) * 128
        return min(hw, max(128, half))
    if hw % 128 == 0:
        tm = 128
        for cand in range(128, min(max_tm, cap) + 1, 128):
            if hw % cand == 0:
                tm = cand
        return tm
    # Ragged tail: lane-aligned tile; Pallas masks the overhanging last block.
    return max(128, (min(max_tm, cap) // 128) * 128)


def _upsample_unfused(x, weight, bias, *, vmem_limit):
    n, c_in, h, w = x.shape
    c_out = weight.shape[1]
    r = 4 * c_out
    hw = h * w

    x3 = x.reshape(n, c_in, hw)                                      # pure view of NCHW
    # Note: weights follow the activation dtype here (bf16 activations -> bf16 matmul);
    # the fused path above keeps its weight matrices in f32.
    wt = jnp.transpose(weight, (1, 2, 3, 0)).reshape(r, c_in).astype(x.dtype)
    b_col = jnp.repeat(bias.astype(jnp.float32), 4).reshape(r, 1)

    itemsize = jnp.dtype(x.dtype).itemsize
    tm = _pick_tile_m(hw, n, c_in, r, itemsize, vmem_limit)

    y = pl.pallas_call(
        _tconv_flat_kernel,
        out_shape=jax.ShapeDtypeStruct((n, r, hw), x.dtype),
        grid_spec=pltpu.PrefetchScalarGridSpec(
            num_scalar_prefetch=0,
            grid=(n, pl.cdiv(hw, tm)),
            in_specs=[
                pl.BlockSpec((1, c_in, tm), lambda b, m: (b, 0, m)),
                pl.BlockSpec((r, c_in), lambda b, m: (0, 0)),
                pl.BlockSpec((r, 1), lambda b, m: (0, 0)),
            ],
            out_specs=pl.BlockSpec((1, r, tm), lambda b, m: (b, 0, m)),
        ),
        compiler_params=pltpu.CompilerParams(
            dimension_semantics=("parallel", "parallel"),
            vmem_limit_bytes=vmem_limit,
        ),
    )(x3, wt, b_col)

    # One XLA layout pass interleaving the 2x2 kernel positions (fused path avoids this).
    y = y.reshape(n, c_out, 2, 2, h, w)
    return jnp.transpose(y, (0, 1, 4, 2, 5, 3)).reshape(n, c_out, 2 * h, 2 * w)


# ---------------------------------------------------------------------------
# public wrapper
# ---------------------------------------------------------------------------
@functools.partial(jax.jit, static_argnames=("force_unfused",))
def upsample_block_transp_conv(x_nchw, weight, bias, *, force_unfused=False):
    """Equivalent of nn.ConvTranspose2d(inp_c, out_c, kernel_size=2, stride=2).

    x_nchw : (N, C_in, H, W)
    weight : (C_in, C_out, 2, 2)   -- PyTorch ConvTranspose2d weight layout
    bias   : (C_out,)
    returns: (N, C_out, 2H, 2W)
    """
    n, c_in, h, w = x_nchw.shape
    c_out = weight.shape[1]
    itemsize = jnp.dtype(x_nchw.dtype).itemsize
    vmem_limit = _vmem_limit_bytes()
    if (not force_unfused) and _fused_ok(n, c_in, c_out, h, w, itemsize):
        return _upsample_fused(x_nchw, weight, bias, vmem_limit=vmem_limit)
    return _upsample_unfused(x_nchw, weight, bias, vmem_limit=vmem_limit)


def _reference_transp_conv(x_nchw, weight, bias):
    """Pure-JAX reference: out[n,oc,2i+ki,2j+kj] = sum_ic x[n,ic,i,j]*W[ic,oc,ki,kj] + b[oc]."""
    n, c_in, h, w = x_nchw.shape
    c_out = weight.shape[1]
    patches = jnp.einsum("nihw,iokl->nohkwl", x_nchw, weight)     # (N,C_out,H,2,W,2)
    out = patches.reshape(n, c_out, 2 * h, 2 * w)
    return out + bias[None, :, None, None]


if __name__ == "__main__":
    key = jax.random.PRNGKey(0)
    k_x, k_w, k_b = jax.random.split(key, 3)

    N, inp_c, H, W = 2, 4, 16, 16
    out_c = 8

    x = jax.random.normal(k_x, (N, inp_c, H, W), dtype=jnp.float32)
    # Deterministic init mimicking PyTorch's default uniform(-1/sqrt(fan), 1/sqrt(fan))
    fan = inp_c * 2 * 2
    bound = 1.0 / (fan ** 0.5)
    weight = jax.random.uniform(k_w, (inp_c, out_c, 2, 2), jnp.float32, -bound, bound)
    bias = jax.random.uniform(k_b, (out_c,), jnp.float32, -bound, bound)

    ref = _reference_transp_conv(x, weight, bias)

    # main (fused) path
    out = jax.block_until_ready(upsample_block_transp_conv(x, weight, bias))
    assert out.shape == (N, out_c, 2 * H, 2 * W), out.shape
    assert jnp.allclose(out, ref, atol=1e-5, rtol=1e-5), "fused path mismatch vs reference"

    # unfused fallback path (used for shapes outside the fused-eligibility window)
    out_fb = jax.block_until_ready(
        upsample_block_transp_conv(x, weight, bias, force_unfused=True))
    assert jnp.allclose(out_fb, ref, atol=1e-5, rtol=1e-5), "fallback path mismatch vs reference"

    # second fused-path shape: exercises nb > 1 images per grid step (batch tiling)
    k_x2, k_w2, k_b2 = jax.random.split(jax.random.PRNGKey(1), 3)
    N2, c_in2, H2, W2, c_out2 = 4, 2, 8, 8, 4
    x2 = jax.random.normal(k_x2, (N2, c_in2, H2, W2), dtype=jnp.float32)
    w2 = jax.random.uniform(k_w2, (c_in2, c_out2, 2, 2), jnp.float32, -0.5, 0.5)
    b2 = jax.random.uniform(k_b2, (c_out2,), jnp.float32, -0.5, 0.5)
    out2 = jax.block_until_ready(upsample_block_transp_conv(x2, w2, b2))
    assert jnp.allclose(out2, _reference_transp_conv(x2, w2, b2), atol=1e-5, rtol=1e-5), \
        "fused path (batched tiles) mismatch vs reference"

    print("KERNEL_OK")
</pallas_src>

<mosaic_0001>
module attributes {stable_mosaic.version = 11 : i64} {
  func.func @_fused_kernel(%arg0: i32, %arg1: memref<1x64x16xf32, #tpu.memory_space<vmem>>, %arg2: memref<512x64xf32, #tpu.memory_space<vmem>>, %arg3: memref<16x32xf32, #tpu.memory_space<vmem>>, %arg4: memref<16x32xf32, #tpu.memory_space<vmem>>, %arg5: memref<256x1xf32, #tpu.memory_space<vmem>>, %arg6: memref<1x256x32xf32, #tpu.memory_space<vmem>>) attributes {dimension_semantics = [#tpu.dimension_semantics<parallel>], iteration_bounds = array<i64: 2>, scalar_prefetch = 0 : i64, scratch_operands = 0 : i64, tpu.core_type = #tpu.core_type<tc>, window_params = [{transform_indices = @transform_0, window_bounds = array<i64: 1, 64, 16>}, {pipeline_mode = #tpu.pipeline_mode<synchronous>, transform_indices = @transform_1, window_bounds = array<i64: 512, 64>}, {pipeline_mode = #tpu.pipeline_mode<synchronous>, transform_indices = @transform_2, window_bounds = array<i64: 16, 32>}, {pipeline_mode = #tpu.pipeline_mode<synchronous>, transform_indices = @transform_3, window_bounds = array<i64: 16, 32>}, {pipeline_mode = #tpu.pipeline_mode<synchronous>, transform_indices = @transform_4, window_bounds = array<i64: 256, 1>}, {transform_indices = @transform_5, window_bounds = array<i64: 1, 256, 32>}]} {
    %c0 = arith.constant 0 : index
    %c0_0 = arith.constant 0 : index
    %0 = vector.load %arg2[%c0, %c0_0] : memref<512x64xf32, #tpu.memory_space<vmem>>, vector<512x64xf32>
    %c0_1 = arith.constant 0 : index
    %c0_2 = arith.constant 0 : index
    %1 = vector.load %arg3[%c0_1, %c0_2] : memref<16x32xf32, #tpu.memory_space<vmem>>, vector<16x32xf32>
    %c0_3 = arith.constant 0 : index
    %c0_4 = arith.constant 0 : index
    %2 = vector.load %arg4[%c0_3, %c0_4] : memref<16x32xf32, #tpu.memory_space<vmem>>, vector<16x32xf32>
    %c0_5 = arith.constant 0 : index
    %c0_6 = arith.constant 0 : index
    %3 = vector.load %arg5[%c0_5, %c0_6] : memref<256x1xf32, #tpu.memory_space<vmem>>, vector<256x1xf32>
    %c0_7 = arith.constant 0 : index
    %c0_8 = arith.constant 0 : index
    %c0_9 = arith.constant 0 : index
    %4 = vector.load %arg1[%c0_7, %c0_8, %c0_9] : memref<1x64x16xf32, #tpu.memory_space<vmem>>, vector<1x64x16xf32>
    %5 = vector.shape_cast %4 : vector<1x64x16xf32> to vector<64x16xf32>
    %cst = arith.constant dense<0.000000e+00> : vector<512x16xf32>
    %6 = tpu.matmul %0, %5, %cst {dimension_numbers = #tpu.dot_dimension_numbers<[1], [0], [0], [1], [0, 0, 1, 1], [], []>} : vector<512x64xf32>, vector<64x16xf32>, vector<512x16xf32> -> vector<512x16xf32>
    %7 = vector.extract_strided_slice %6 {offsets = [0, 0], sizes = [256, 16], strides = [1, 1]} : vector<512x16xf32> to vector<256x16xf32>
    %cst_10 = arith.constant dense<0.000000e+00> : vector<256x32xf32>
    %8 = tpu.matmul %7, %1, %cst_10 {dimension_numbers = #tpu.dot_dimension_numbers<[1], [0], [0], [1], [0, 0, 1, 1], [], []>} : vector<256x16xf32>, vector<16x32xf32>, vector<256x32xf32> -> vector<256x32xf32>
    %9 = vector.extract_strided_slice %6 {offsets = [256, 0], sizes = [256, 16], strides = [1, 1]} : vector<512x16xf32> to vector<256x16xf32>
    %cst_11 = arith.constant dense<0.000000e+00> : vector<256x32xf32>
    %10 = tpu.matmul %9, %2, %cst_11 {dimension_numbers = #tpu.dot_dimension_numbers<[1], [0], [0], [1], [0, 0, 1, 1], [], []>} : vector<256x16xf32>, vector<16x32xf32>, vector<256x32xf32> -> vector<256x32xf32>
    %11 = arith.addf %8, %10 : vector<256x32xf32>
    %12 = vector.broadcast %3 : vector<256x1xf32> to vector<256x32xf32>
    %13 = arith.addf %11, %12 : vector<256x32xf32>
    %c0_12 = arith.constant 0 : index
    %c0_13 = arith.constant 0 : index
    %c0_14 = arith.constant 0 : index
    %14 = vector.load %arg6[%c0_12, %c0_13, %c0_14] : memref<1x256x32xf32, #tpu.memory_space<vmem>>, vector<1x256x32xf32>
    %15 = vector.shape_cast %14 : vector<1x256x32xf32> to vector<256x32xf32>
    %16 = vector.shape_cast %13 : vector<256x32xf32> to vector<1x256x32xf32>
    tpu.vector_store %arg6[%c0_12, %c0_13, %c0_14], %16 {strides = array<i32>} : memref<1x256x32xf32, #tpu.memory_space<vmem>>, vector<1x256x32xf32>,
    return
  }
  func.func @transform_0(%arg0: i32) -> (i32, i32, i32) {
    %c0_i32 = arith.constant 0 : i32
    %c0_i32_0 = arith.constant 0 : i32
    %c0_i32_1 = arith.constant 0 : i32
    return %arg0, %c0_i32, %c0_i32_0 : i32, i32, i32
  }
  func.func @transform_1(%arg0: i32) -> (i32, i32) {
    %c0_i32 = arith.constant 0 : i32
    %c0_i32_0 = arith.constant 0 : i32
    %c0_i32_1 = arith.constant 0 : i32
    return %c0_i32, %c0_i32_0 : i32, i32
  }
  func.func @transform_2(%arg0: i32) -> (i32, i32) {
    %c0_i32 = arith.constant 0 : i32
    %c0_i32_0 = arith.constant 0 : i32
    %c0_i32_1 = arith.constant 0 : i32
    return %c0_i32, %c0_i32_0 : i32, i32
  }
  func.func @transform_3(%arg0: i32) -> (i32, i32) {
    %c0_i32 = arith.constant 0 : i32
    %c0_i32_0 = arith.constant 0 : i32
    %c0_i32_1 = arith.constant 0 : i32
    return %c0_i32, %c0_i32_0 : i32, i32
  }
  func.func @transform_4(%arg0: i32) -> (i32, i32) {
    %c0_i32 = arith.constant 0 : i32
    %c0_i32_0 = arith.constant 0 : i32
    %c0_i32_1 = arith.constant 0 : i32
    return %c0_i32, %c0_i32_0 : i32, i32
  }
  func.func @transform_5(%arg0: i32) -> (i32, i32, i32) {
    %c0_i32 = arith.constant 0 : i32
    %c0_i32_0 = arith.constant 0 : i32
    %c0_i32_1 = arith.constant 0 : i32
    return %arg0, %c0_i32, %c0_i32_0 : i32, i32, i32
  }
}

</mosaic_0001>

<bundles_post_ra>
// kernel: upsample_block_transp_conv.1
= control target key start
LH: loop header
LB: loop body
LE: loop exit
PB: predicated region body
PF: predicated region fallthrough
CT: control target
= control target key end

     0   :  { %10 = vsyncpa [#allocation3], 0  ;;  %s2331_s0 = inlined_call_operand.vmem [shape: f32[2,64,16], index: 0, kind: input, shape index: {}]   ;;  %s2332_s1 = inlined_call_operand.vmem [shape: f32[512,64], index: 1, kind: input, shape index: {}]   ;;  %s2333_s2 = inlined_call_operand.vmem [shape: f32[16,32], index: 2, kind: input, shape index: {}]   ;;  %s2334_s3 = inlined_call_operand.vmem [shape: f32[16,32], index: 3, kind: input, shape index: {}]   ;;  %s2335_s4 = inlined_call_operand.vmem [shape: f32[256,1], index: 4, kind: input, shape index: {}]   ;;  %s2336_s5 = inlined_call_operand.hbm [shape: f32[2,256,32], index: 5, kind: output, shape index: {}]  }
   0x1   :  { %12 = vsyncpa [#allocation3 + $0x1], 0  ;;  %s1747_s18 = smov 0   ;;  %s1749_s19 = smov 0  }
   0x2   :  { %s1751_s20 = smov 0   ;;  %s1753_s21 = smov 0  }
   0x3 LB: > { %s1768_s22 = sadd.s32 4294967295, %s1712_s21   ;;  %s1455_s23 = sadd.s32 4294967294, %s1712_s21   ;;  %s1712_s21 = sphi %s1753_s21, %s2342_s21   ;;  %s1708_s20 = sphi %s1751_s20, %s2341_s20   ;;  %s1704_s19 = sphi %s1749_s19, %s2340_s19   ;;  %s1700_s18 = sphi %s1747_s18, %s2339_s18  }
   0x4   : > { %s1772_s24 = sadd.s32 1, %s1712_s21   ;;  %s135_s25 = sadd.s32 1, %s1708_s20 }
   0x5   : > { %s132_s26 = ssub.s32 %s1712_s21, %s1772_s24  ;;  %p145_p0 = scmp.ne.s32.totalorder %s1708_s20, %s1704_s19 }
   0x6   : > { %p133_p1 = scmp.eq.s32.totalorder %s132_s26, 0  ;;  %p146_p2 = scmp.eq.s32.totalorder %s1768_s22, 1 }
   0x7   : > { %p151_p3 = scmp.ne.s32.totalorder %s1704_s19, %s1700_s18  ;;  %p152_p4 = scmp.eq.s32.totalorder %s1455_s23, 1 }
   0x8   : > { %s1783_s27 = scalar_select %p133_p1, %s1708_s20, %s135_s25  }
   0x9   : > { %p1785_p5 = por %p146_p2, %p145_p0  ;;  %p1789_p6 = por %p152_p4, %p151_p3 }
   0xa   : > { %p1458_p7 = scmp.ge.s32.totalorder %s1712_s21, 1  ;;  %p190_p8 = scmp.lt.s32.totalorder %s1712_s21, 3 }
   0xc   : > { %p191_p9 = pnand %p1458_p7, %p190_p8 }
   0xd   : > { %p218_p10 = scmp.lt.s32.totalorder (!%p191_p9), %s1768_s22, 1  ;;  %s215_s8 = sand.u32 (!%p191_p9), 1, %s1704_s19  }
   0xe   : > { %194 = sbr.rel (%p191_p9) target bundleno = 553 (0x229), region = 40  ;;  %s1459_s13 = sshll.u32 (!%p191_p9), %s215_s8, 8 }
   0xf   : > { %s2168_s14 = scalar_lea.vmem (!%p191_p9), [#allocation2], %s1459_s13  ;;  %s1596_s7 = sshll.u32 (!%p191_p9), %s1768_s22, 8 }
  0x10   : > { %s1389_s11 = scalar_lea.hbm (!%p191_p9), %s2336_s5, %s1596_s7  ;;  %s1390_s12 = sshll.u32 (!%p191_p9), %s2168_s14, 4  ;;  %s1391_s12 = int_to_ptr.vmem [resolvable:$true] %s1390_s12 }
  0x11   : > { %s1392_s13 = sshll.u32 (!%p191_p9), %s1389_s11, 4  ;;  %s1670_s25 = scalar_lea.hbm (!%p191_p9), %s2336_s5, 512  ;;  %s1393_s13 = int_to_ptr.hbm [resolvable:$true] %s1392_s13 }
  0x12   : > { %s1664_s15 = sshra.s32 (!%p191_p9), %s1393_s13, 4  ;;  %s1665_s15 = int_to_ptr.hbm [resolvable:$true] %s1664_s15 }
  0x13   : > { %s219_s30 = scalar_select %p218_p10, %s1768_s22, 1  ;;  %v223_v8 = vld [vmem:[%s2332_s1] sm:$0xff]  ;;  %vm331_vm0 = vcmask 523264   ;;  %v224_v10 = vld [vmem:[%s2332_s1 + $0x8] sm:$0xff]  ;;  %v225_v12 = vld [vmem:[%s2332_s1 + $0x10] sm:$0xff]  ;;  %v1714_v42 = vmov 0  }
  0x14   : > { %v255_v9 = vld [vmem:[%s2332_s1 + $0x100] sm:$0xff]  ;;  %v256_v11 = vld [vmem:[%s2332_s1 + $0x108] sm:$0xff]  ;;  %v257_v13 = vld [vmem:[%s2332_s1 + $0x110] sm:$0xff]  ;;  %1647 = vset.pattern.permute.xlu0 %v1714_v42  ;;  %1648 = vset.pattern.permute.xlu1 %v1714_v42  ;;  %vm733_vm1 = vcmask 130048   ;;  %vm1344_vm2 = vcmask 261120   ;;  %s1378_s22 = scalar_lea.sflag [#allocation3], %s215_s8  ;;  %p1671_p0 = scmp.lt.s32.totalorder %s1665_s15, %s2336_s5 }
  0x15   : > { %s1595_s6 = sshll.u32 %s219_s30, 6  ;;  %v226_v14 = vld [vmem:[%s2332_s1 + $0x18] sm:$0xff]  ;;  %v227_v16 = vld [vmem:[%s2332_s1 + $0x20] sm:$0xff]  ;;  %v228_v18 = vld [vmem:[%s2332_s1 + $0x28] sm:$0xff]  ;;  %1649 = vset.pattern.permute.xlu2 %v1714_v42  ;;  %s1666_s16 = scalar_lea.hbm %s1665_s15, 256 }
  0x16   : > { %s222_s9 = scalar_lea.vmem %s2331_s0, %s1595_s6  ;;  %v258_v15 = vld [vmem:[%s2332_s1 + $0x118] sm:$0xff]  ;;  %v259_v17 = vld [vmem:[%s2332_s1 + $0x120] sm:$0xff]  ;;  %v260_v19 = vld [vmem:[%s2332_s1 + $0x128] sm:$0xff]  ;;  %p1667_p11 = scmp.ne.s32.totalorder %s1665_s15, %s1666_s16 }
  0x17   : > { %v330_v0 = vld [vmem:[%s222_s9 + $0x38] sm:$0xff]  ;;  %v329_v1 = vld [vmem:[%s222_s9 + $0x30] sm:$0xff]  ;;  %v328_v2 = vld [vmem:[%s222_s9 + $0x28] sm:$0xff]  ;;  %p1672_p1 = scmp.lt.s32.totalorder %s1670_s25, %s1666_s16 }
  0x18   : > { %532 = vmatpush.msra.mxu0 %v330_v0  ;;  %1597 = vmatpush.msra.mxu3 %v330_v0  ;;  %v327_v3 = vld [vmem:[%s222_s9 + $0x20] sm:$0xff]  ;;  %v326_v4 = vld [vmem:[%s222_s9 + $0x18] sm:$0xff]  ;;  %v325_v5 = vld [vmem:[%s222_s9 + $0x10] sm:$0xff]  ;;  %p1668_p12 = pnand %p1667_p11, %p1785_p5 }
  0x19   : > { %v324_v6 = vld [vmem:[%s222_s9 + $0x8] sm:$0xff]  ;;  %v323_v7 = vld [vmem:[%s222_s9] sm:$0xff]  ;;  %v229_v20 = vld [vmem:[%s2332_s1 + $0x30] sm:$0xff]  ;;  %p1673_p2 = por %p1672_p1, %p1671_p0 }
  0x1a   : > { %533 = vmatpush.msra.mxu0 %v329_v1  ;;  %1598 = vmatpush.msra.mxu3 %v329_v1  ;;  %v261_v21 = vld [vmem:[%s2332_s1 + $0x130] sm:$0xff]  ;;  %v230_v22 = vld [vmem:[%s2332_s1 + $0x38] sm:$0xff]  ;;  %v231_v24 = vld [vmem:[%s2332_s1 + $0x40] sm:$0xff]  ;;  %p1669_p13 = pneg %p1668_p12 }
  0x1b   : > { %v262_v23 = vld [vmem:[%s2332_s1 + $0x138] sm:$0xff]  ;;  %v263_v25 = vld [vmem:[%s2332_s1 + $0x140] sm:$0xff]  ;;  %v232_v26 = vld [vmem:[%s2332_s1 + $0x48] sm:$0xff] }
  0x1c   : > { %534 = vmatpush.msra.mxu0 %v328_v2  ;;  %1599 = vmatpush.msra.mxu3 %v328_v2  ;;  %v264_v27 = vld [vmem:[%s2332_s1 + $0x148] sm:$0xff]  ;;  %v233_v28 = vld [vmem:[%s2332_s1 + $0x50] sm:$0xff]  ;;  %v234_v30 = vld [vmem:[%s2332_s1 + $0x58] sm:$0xff]  ;;  %p1674_p3 = pnand %p1673_p2, %p1669_p13 }
  0x1d   : > { %v265_v29 = vld [vmem:[%s2332_s1 + $0x150] sm:$0xff]  ;;  %v266_v31 = vld [vmem:[%s2332_s1 + $0x158] sm:$0xff]  ;;  %v288_v32 = vld [vmem:[%s2333_s2 + $0x8] sm:$0xff] }
  0x1e   : > { %535 = vmatpush.msra.mxu0 %v327_v3  ;;  %1600 = vmatpush.msra.mxu3 %v327_v3  ;;  %v287_v33 = vld [vmem:[%s2333_s2] sm:$0xff]  ;;  %v290_v36 = vld [vmem:[%s2334_s3 + $0x8] sm:$0xff]  ;;  %v237_v40 = vld [vmem:[%s2332_s1 + $0x70] sm:$0xff] }
  0x1f   : > { %1053 = vmatpush.msra.mxu2 %v288_v32  ;;  %v235_v34 = vld [vmem:[%s2332_s1 + $0x60] sm:$0xff]  ;;  %844 = vmatpush.msra.mxu1 %v290_v36  ;;  %v236_v38 = vld [vmem:[%s2332_s1 + $0x68] sm:$0xff]  ;;  %v269_v41 = vld [vmem:[%s2332_s1 + $0x170] sm:$0xff] }
  0x20   : > { %536 = vmatpush.msra.mxu0 %v326_v4  ;;  %1601 = vmatpush.msra.mxu3 %v326_v4  ;;  %v267_v35 = vld [vmem:[%s2332_s1 + $0x160] sm:$0xff]  ;;  %v268_v39 = vld [vmem:[%s2332_s1 + $0x168] sm:$0xff]  ;;  %v238_v44 = vld [vmem:[%s2332_s1 + $0x78] sm:$0xff] }
  0x21   : > { %1054 = vmatpush.msra.mxu2 %v287_v33  ;;  %v289_v37 = vld [vmem:[%s2334_s3] sm:$0xff]  ;;  %v270_v45 = vld [vmem:[%s2332_s1 + $0x178] sm:$0xff]  ;;  %v292_v46 = vld [vmem:[%s2335_s4 + $0x8] sm:$0xff] }
  0x22   : > { %537 = vmatpush.msra.mxu0 %v325_v5  ;;  %1602 = vmatpush.msra.mxu3 %v325_v5  ;;  %v291_v43 = vld [vmem:[%s2335_s4] sm:$0xff]  ;;  %v293_v50 = vld [vmem:[%s2335_s4 + $0x10] sm:$0xff]  ;;  %v240_v53 = vld [vmem:[%s2332_s1 + $0x88] sm:$0xff] }
  0x23   : > { %845 = vmatpush.msra.mxu1 %v289_v37  ;;  %1154 = vperm.xlu0 %1647, %v291_v43   ;;  %v239_v48 = vld [vmem:[%s2332_s1 + $0x80] sm:$0xff]  ;;  %v272_v54 = vld [vmem:[%s2332_s1 + $0x188] sm:$0xff]  ;;  %v294_v55 = vld [vmem:[%s2335_s4 + $0x18] sm:$0xff] }
  0x24   : > { %538 = vmatpush.msra.mxu0 %v324_v6  ;;  %1603 = vmatpush.msra.mxu3 %v324_v6  ;;  %v271_v49 = vld [vmem:[%s2332_s1 + $0x180] sm:$0xff]  ;;  %v241_v58 = vld [vmem:[%s2332_s1 + $0x90] sm:$0xff]  ;;  %v242_v62 = vld [vmem:[%s2332_s1 + $0x98] sm:$0xff] }
  0x25   : > { %1164 = vperm.xlu1 %1648, %v293_v50   ;;  %v273_v59 = vld [vmem:[%s2332_s1 + $0x190] sm:$0xff]  ;;  %v274_v63 = vld [vmem:[%s2332_s1 + $0x198] sm:$0xff]  ;;  %v243_v2 = vld [vmem:[%s2332_s1 + $0xa0] sm:$0xff] }
  0x26   : > { %539 = vmatpush.msra.mxu0 %v323_v7  ;;  %1604 = vmatpush.msra.mxu3 %v323_v7  ;;  %v275_v3 = vld [vmem:[%s2332_s1 + $0x1a0] sm:$0xff]  ;;  %v297_v4 = vld [vmem:[%s2335_s4 + $0x30] sm:$0xff]  ;;  %v244_v7 = vld [vmem:[%s2332_s1 + $0xa8] sm:$0xff] }
  0x27   : > { %1462 = vmatmul.msk.f32.vlgmr.msra.gmra.mxu0 %vm331_vm0, %v223_v8  ;;  %1494 = vmatmul.msk.f32.vlgmr.msra.gmra.mxu3 %vm331_vm0, %v255_v9  ;;  %v276_v8 = vld [vmem:[%s2332_s1 + $0x1a8] sm:$0xff]  ;;  %v295_v9 = vld [vmem:[%s2335_s4 + $0x20] sm:$0xff]  ;;  %v249_v33 = vld [vmem:[%s2332_s1 + $0xd0] sm:$0xff] }
  0x28   : > { %1174 = vperm.xlu2 %1649, %v295_v9   ;;  %v251_v43 = vld [vmem:[%s2332_s1 + $0xe0] sm:$0xff]  ;;  %v306_v50 = vld [vmem:[%s2335_s4 + $0x78] sm:$0xff] }
  0x2b   : > { %1159 = vperm.xlu0 %1647, %v292_v46  }
  0x2d   : > { %1169 = vperm.xlu1 %1648, %v294_v55   ;;  %v307_v55 = vld [vmem:[%s2335_s4 + $0x80] sm:$0xff] }
  0x2f   : > { %1463 = vmatmul.msk.f32.gmra.mxu0 %vm331_vm0, %v224_v10  ;;  %1495 = vmatmul.msk.f32.gmra.mxu3 %vm331_vm0, %v256_v11  ;;  %v298_v10 = vld [vmem:[%s2335_s4 + $0x38] sm:$0xff] }
  0x33   : > { %1184 = vperm.xlu0 %1647, %v297_v4  }
  0x35   : > { %1189 = vperm.xlu1 %1648, %v298_v10   ;;  %v316_v10 = vld [vmem:[%s2335_s4 + $0xc8] sm:$0xff] }
  0x37   : > { %1464 = vmatmul.msk.f32.gmra.mxu0 %vm331_vm0, %v225_v12  ;;  %1496 = vmatmul.msk.f32.gmra.mxu3 %vm331_vm0, %v257_v13  ;;  %v245_v13 = vld [vmem:[%s2332_s1 + $0xb0] sm:$0xff] }
  0x3f   : > { %1465 = vmatmul.msk.f32.gmra.mxu0 %vm331_vm0, %v226_v14  ;;  %1497 = vmatmul.msk.f32.gmra.mxu3 %vm331_vm0, %v258_v15  ;;  %v277_v14 = vld [vmem:[%s2332_s1 + $0x1b0] sm:$0xff]  ;;  %v296_v15 = vld [vmem:[%s2335_s4 + $0x28] sm:$0xff] }
  0x40   : > { %1179 = vperm.xlu2 %1649, %v296_v15  }
  0x47   : > { %1466 = vmatmul.msk.f32.gmra.mxu0 %vm331_vm0, %v227_v16  ;;  %1498 = vmatmul.msk.f32.gmra.mxu3 %vm331_vm0, %v259_v17 }
  0x4f   : > { %1467 = vmatmul.msk.f32.gmra.mxu0 %vm331_vm0, %v228_v18  ;;  %1499 = vmatmul.msk.f32.gmra.mxu3 %vm331_vm0, %v260_v19  ;;  %v246_v18 = vld [vmem:[%s2332_s1 + $0xb8] sm:$0xff] }
  0x50   : > { %v278_v19 = vld [vmem:[%s2332_s1 + $0x1b8] sm:$0xff] }
  0x57   : > { %1468 = vmatmul.msk.f32.gmra.mxu0 %vm331_vm0, %v229_v20  ;;  %1500 = vmatmul.msk.f32.gmra.mxu3 %vm331_vm0, %v261_v21  ;;  %v300_v20 = vld [vmem:[%s2335_s4 + $0x48] sm:$0xff] }
  0x58   : > { %1199 = vperm.xlu0 %1647, %v300_v20   ;;  %v308_v20 = vld [vmem:[%s2335_s4 + $0x88] sm:$0xff] }
  0x5f   : > { %1469 = vmatmul.msk.f32.gmra.mxu0 %vm331_vm0, %v230_v22  ;;  %1501 = vmatmul.msk.f32.gmra.mxu3 %vm331_vm0, %v262_v23  ;;  %v247_v23 = vld [vmem:[%s2332_s1 + $0xc0] sm:$0xff] }
  0x67   : > { %1470 = vmatmul.msk.f32.gmra.mxu0 %vm331_vm0, %v231_v24  ;;  %1502 = vmatmul.msk.f32.gmra.mxu3 %vm331_vm0, %v263_v25  ;;  %v279_v24 = vld [vmem:[%s2332_s1 + $0x1c0] sm:$0xff]  ;;  %v301_v25 = vld [vmem:[%s2335_s4 + $0x50] sm:$0xff] }
  0x68   : > { %1204 = vperm.xlu1 %1648, %v301_v25  }
  0x6f   : > { %1471 = vmatmul.msk.f32.gmra.mxu0 %vm331_vm0, %v232_v26  ;;  %1503 = vmatmul.msk.f32.gmra.mxu3 %vm331_vm0, %v264_v27 }
  0x77   : > { %1472 = vmatmul.msk.f32.gmra.mxu0 %vm331_vm0, %v233_v28  ;;  %1504 = vmatmul.msk.f32.gmra.mxu3 %vm331_vm0, %v265_v29  ;;  %v248_v28 = vld [vmem:[%s2332_s1 + $0xc8] sm:$0xff] }
  0x78   : > { %v280_v29 = vld [vmem:[%s2332_s1 + $0x1c8] sm:$0xff] }
  0x7f   : > { %1473 = vmatmul.msk.f32.gmra.mxu0 %vm331_vm0, %v234_v30  ;;  %1505 = vmatmul.msk.f32.gmra.mxu3 %vm331_vm0, %v266_v31  ;;  %v299_v30 = vld [vmem:[%s2335_s4 + $0x40] sm:$0xff] }
  0x80   : > { %1194 = vperm.xlu2 %1649, %v299_v30   ;;  %v321_v30 = vld [vmem:[%s2335_s4 + $0xf0] sm:$0xff] }
  0x87   : > { %1474 = vmatmul.msk.f32.gmra.mxu0 %vm331_vm0, %v235_v34  ;;  %1506 = vmatmul.msk.f32.gmra.mxu3 %vm331_vm0, %v267_v35  ;;  %v281_v34 = vld [vmem:[%s2332_s1 + $0x1d0] sm:$0xff]  ;;  %v303_v35 = vld [vmem:[%s2335_s4 + $0x60] sm:$0xff] }
  0x88   : > { %1214 = vperm.xlu0 %1647, %v303_v35  }
  0x8f   : > { %1475 = vmatmul.msk.f32.gmra.mxu0 %vm331_vm0, %v236_v38  ;;  %1507 = vmatmul.msk.f32.gmra.mxu3 %vm331_vm0, %v268_v39  ;;  %v250_v38 = vld [vmem:[%s2332_s1 + $0xd8] sm:$0xff] }
  0x90   : > { %v282_v39 = vld [vmem:[%s2332_s1 + $0x1d8] sm:$0xff]  ;;  %1229 = vperm.xlu0 %1647, %v306_v50  }
  0x97   : > { %1476 = vmatmul.msk.f32.gmra.mxu0 %vm331_vm0, %v237_v40  ;;  %1508 = vmatmul.msk.f32.gmra.mxu3 %vm331_vm0, %v269_v41  ;;  %v304_v40 = vld [vmem:[%s2335_s4 + $0x68] sm:$0xff] }
  0x98   : > { %1219 = vperm.xlu1 %1648, %v304_v40  }
  0x9f   : > { %1477 = vmatmul.msk.f32.gmra.mxu0 %vm331_vm0, %v238_v44  ;;  %1509 = vmatmul.msk.f32.gmra.mxu3 %vm331_vm0, %v270_v45  ;;  %v283_v44 = vld [vmem:[%s2332_s1 + $0x1e0] sm:$0xff]  ;;  %v302_v45 = vld [vmem:[%s2335_s4 + $0x58] sm:$0xff] }
  0xa0   : > { %1209 = vperm.xlu2 %1649, %v302_v45   ;;  %1234 = vperm.xlu1 %1648, %v307_v55  }
  0xa4   : > { %v541_v47 = vpop.f32.mrf.mxu0 }
  0xa5   : > { %1558 = vmatmul.msk.f32.vlgmr.msra.gmra.mxu2 %vm733_vm1, %v541_v47 }
  0xa7   : > { %1478 = vmatmul.msk.f32.gmra.mxu0 %vm331_vm0, %v239_v48  ;;  %1510 = vmatmul.msk.f32.gmra.mxu3 %vm331_vm0, %v271_v49  ;;  %v252_v48 = vld [vmem:[%s2332_s1 + $0xe8] sm:$0xff] }
  0xa8   : > { %v284_v49 = vld [vmem:[%s2332_s1 + $0x1e8] sm:$0xff] }
  0xaa   : > { %v637_v51 = vpop.f32.mrf.mxu3 }
  0xab   : > { %1526 = vmatmul.msk.f32.vlgmr.msra.gmra.mxu1 %vm733_vm1, %v637_v51 }
  0xac   : > { %v544_v52 = vpop.f32.mrf.mxu0 }
  0xad   : > { %1559 = vmatmul.msk.f32.gmra.mxu2 %vm733_vm1, %v544_v52 }
  0xaf   : > { %1479 = vmatmul.msk.f32.gmra.mxu0 %vm331_vm0, %v240_v53  ;;  %1511 = vmatmul.msk.f32.gmra.mxu3 %vm331_vm0, %v272_v54  ;;  %v253_v53 = vld [vmem:[%s2332_s1 + $0xf0] sm:$0xff] }
  0xb0   : > { %v285_v54 = vld [vmem:[%s2332_s1 + $0x1f0] sm:$0xff] }
  0xb2   : > { %v640_v56 = vpop.f32.mrf.mxu3 }
  0xb3   : > { %1527 = vmatmul.msk.f32.gmra.mxu1 %vm733_vm1, %v640_v56 }
  0xb4   : > { %v547_v57 = vpop.f32.mrf.mxu0 }
  0xb5   : > { %1560 = vmatmul.msk.f32.gmra.mxu2 %vm733_vm1, %v547_v57 }
  0xb7   : > { %1480 = vmatmul.msk.f32.gmra.mxu0 %vm331_vm0, %v241_v58  ;;  %1512 = vmatmul.msk.f32.gmra.mxu3 %vm331_vm0, %v273_v59  ;;  %v254_v58 = vld [vmem:[%s2332_s1 + $0xf8] sm:$0xff] }
  0xb8   : > { %v286_v59 = vld [vmem:[%s2332_s1 + $0x1f8] sm:$0xff] }
  0xba   : > { %v643_v60 = vpop.f32.mrf.mxu3 }
  0xbb   : > { %1528 = vmatmul.msk.f32.gmra.mxu1 %vm733_vm1, %v643_v60  ;;  %v305_v60 = vld [vmem:[%s2335_s4 + $0x70] sm:$0xff] }
  0xbc   : > { %v550_v61 = vpop.f32.mrf.mxu0  ;;  %1224 = vperm.xlu2 %1649, %v305_v60  }
  0xbd   : > { %1561 = vmatmul.msk.f32.gmra.mxu2 %vm733_vm1, %v550_v61  ;;  %v310_v61 = vld [vmem:[%s2335_s4 + $0x98] sm:$0xff] }
  0xbe   : > { %1249 = vperm.xlu1 %1648, %v310_v61  }
  0xbf   : > { %1481 = vmatmul.msk.f32.gmra.mxu0 %vm331_vm0, %v242_v62  ;;  %1513 = vmatmul.msk.f32.gmra.mxu3 %vm331_vm0, %v274_v63  ;;  %v309_v62 = vld [vmem:[%s2335_s4 + $0x90] sm:$0xff] }
  0xc0   : > { %1244 = vperm.xlu0 %1647, %v309_v62   ;;  %v320_v62 = vld [vmem:[%s2335_s4 + $0xe8] sm:$0xff] }
  0xc2   : > { %v646_v0 = vpop.f32.mrf.mxu3 }
  0xc3   : > { %1529 = vmatmul.msk.f32.gmra.mxu1 %vm733_vm1, %v646_v0 }
  0xc4   : > { %v553_v1 = vpop.f32.mrf.mxu0  ;;  %1239 = vperm.xlu2 %1649, %v308_v20  }
  0xc5   : > { %1562 = vmatmul.msk.f32.gmra.mxu2 %vm733_vm1, %v553_v1  ;;  %v1155_v1 = vpop.permute.xlu0 %1154 }
  0xc7   : > { %1482 = vmatmul.msk.f32.gmra.mxu0 %vm331_vm0, %v243_v2  ;;  %1514 = vmatmul.msk.f32.gmra.mxu3 %vm331_vm0, %v275_v3  ;;  %v313_v2 = vld [vmem:[%s2335_s4 + $0xb0] sm:$0xff]  ;;  %v312_v3 = vld [vmem:[%s2335_s4 + $0xa8] sm:$0xff] }
  0xc8   : > { %1264 = vperm.xlu1 %1648, %v313_v2   ;;  %1259 = vperm.xlu0 %1647, %v312_v3  }
  0xca   : > { %v649_v5 = vpop.f32.mrf.mxu3 }
  0xcb   : > { %1530 = vmatmul.msk.f32.gmra.mxu1 %vm733_vm1, %v649_v5 }
  0xcc   : > { %v556_v6 = vpop.f32.mrf.mxu0 }
  0xcd   : > { %1563 = vmatmul.msk.f32.gmra.mxu2 %vm733_vm1, %v556_v6 }
  0xcf   : > { %1483 = vmatmul.msk.f32.gmra.mxu0 %vm331_vm0, %v244_v7  ;;  %1515 = vmatmul.msk.f32.gmra.mxu3 %vm331_vm0, %v276_v8 }
  0xd0   : > { %1279 = vperm.xlu1 %1648, %v316_v10  }
  0xd2   : > { %v652_v11 = vpop.f32.mrf.mxu3 }
  0xd3   : > { %1531 = vmatmul.msk.f32.gmra.mxu1 %vm733_vm1, %v652_v11  ;;  %v315_v11 = vld [vmem:[%s2335_s4 + $0xc0] sm:$0xff] }
  0xd4   : > { %v559_v12 = vpop.f32.mrf.mxu0  ;;  %1274 = vperm.xlu0 %1647, %v315_v11  }
  0xd5   : > { %1564 = vmatmul.msk.f32.gmra.mxu2 %vm733_vm1, %v559_v12  ;;  %v1160_v12 = vpop.permute.xlu0 %1159 }
  0xd7   : > { %1484 = vmatmul.msk.f32.gmra.mxu0 %vm331_vm0, %v245_v13  ;;  %1516 = vmatmul.msk.f32.gmra.mxu3 %vm331_vm0, %v277_v14 }
  0xda   : > { %v655_v16 = vpop.f32.mrf.mxu3 }
  0xdb   : > { %1532 = vmatmul.msk.f32.gmra.mxu1 %vm733_vm1, %v655_v16 }
  0xdc   : > { %v562_v17 = vpop.f32.mrf.mxu0 }
  0xdd   : > { %1565 = vmatmul.msk.f32.gmra.mxu2 %vm733_vm1, %v562_v17  ;;  %v1185_v55 = vpop.permute.xlu0 %1184 }
  0xdf   : > { %1485 = vmatmul.msk.f32.gmra.mxu0 %vm331_vm0, %v246_v18  ;;  %1517 = vmatmul.msk.f32.gmra.mxu3 %vm331_vm0, %v278_v19  ;;  %v1165_v19 = vpop.permute.xlu1 %1164 }
  0xe2   : > { %v658_v21 = vpop.f32.mrf.mxu3 }
  0xe3   : > { %1533 = vmatmul.msk.f32.gmra.mxu1 %vm733_vm1, %v658_v21  ;;  %v319_v21 = vld [vmem:[%s2335_s4 + $0xe0] sm:$0xff] }
  0xe4   : > { %v565_v22 = vpop.f32.mrf.mxu0  ;;  %1294 = vperm.xlu1 %1648, %v319_v21  }
  0xe5   : > { %1566 = vmatmul.msk.f32.gmra.mxu2 %vm733_vm1, %v565_v22  ;;  %v318_v22 = vld [vmem:[%s2335_s4 + $0xd8] sm:$0xff] }
  0xe6   : > { %1289 = vperm.xlu0 %1647, %v318_v22  }
  0xe7   : > { %1486 = vmatmul.msk.f32.gmra.mxu0 %vm331_vm0, %v247_v23  ;;  %1518 = vmatmul.msk.f32.gmra.mxu3 %vm331_vm0, %v279_v24 }
  0xea   : > { %v661_v26 = vpop.f32.mrf.mxu3 }
  0xeb   : > { %1534 = vmatmul.msk.f32.gmra.mxu1 %vm733_vm1, %v661_v26 }
  0xec   : > { %v568_v27 = vpop.f32.mrf.mxu0 }
  0xed   : > { %1567 = vmatmul.msk.f32.gmra.mxu2 %vm733_vm1, %v568_v27 }
  0xee   : > { %1304 = vperm.xlu0 %1647, %v321_v30  }
  0xef   : > { %1487 = vmatmul.msk.f32.gmra.mxu0 %vm331_vm0, %v248_v28  ;;  %1519 = vmatmul.msk.f32.gmra.mxu3 %vm331_vm0, %v280_v29  ;;  %v322_v29 = vld [vmem:[%s2335_s4 + $0xf8] sm:$0xff] }
  0xf0   : > { %1309 = vperm.xlu1 %1648, %v322_v29  }
  0xf2   : > { %v664_v31 = vpop.f32.mrf.mxu3 }
  0xf3   : > { %1535 = vmatmul.msk.f32.gmra.mxu1 %vm733_vm1, %v664_v31  ;;  %v1170_v31 = vpop.permute.xlu1 %1169 }
  0xf4   : > { %v571_v32 = vpop.f32.mrf.mxu0 }
  0xf5   : > { %1568 = vmatmul.msk.f32.gmra.mxu2 %vm733_vm1, %v571_v32 }
  0xf7   : > { %1488 = vmatmul.msk.f32.gmra.mxu0 %vm331_vm0, %v249_v33  ;;  %1520 = vmatmul.msk.f32.gmra.mxu3 %vm331_vm0, %v281_v34 }
  0xfa   : > { %v667_v36 = vpop.f32.mrf.mxu3 }
  0xfb   : > { %1536 = vmatmul.msk.f32.gmra.mxu1 %vm733_vm1, %v667_v36 }
  0xfc   : > { %v574_v37 = vpop.f32.mrf.mxu0 }
  0xfd   : > { %1569 = vmatmul.msk.f32.gmra.mxu2 %vm733_vm1, %v574_v37 }
  0xff   : > { %1489 = vmatmul.msk.f32.gmra.mxu0 %vm331_vm0, %v250_v38  ;;  %1521 = vmatmul.msk.f32.gmra.mxu3 %vm331_vm0, %v282_v39  ;;  %v1175_v38 = vpop.permute.xlu2 %1174  ;;  %v311_v39 = vld [vmem:[%s2335_s4 + $0xa0] sm:$0xff] }
 0x100   : > { %1254 = vperm.xlu2 %1649, %v311_v39  }
 0x102   : > { %v670_v41 = vpop.f32.mrf.mxu3 }
 0x103   : > { %1537 = vmatmul.msk.f32.gmra.mxu1 %vm733_vm1, %v670_v41 }
 0x104   : > { %v577_v42 = vpop.f32.mrf.mxu0 }
 0x105   : > { %1570 = vmatmul.msk.f32.gmra.mxu2 %vm733_vm1, %v577_v42 }
 0x107   : > { %1490 = vmatmul.msk.f32.gmra.mxu0 %vm331_vm0, %v251_v43  ;;  %1522 = vmatmul.msk.f32.gmra.mxu3 %vm331_vm0, %v283_v44 }
 0x10a   : > { %v673_v46 = vpop.f32.mrf.mxu3 }
 0x10b   : > { %1538 = vmatmul.msk.f32.gmra.mxu1 %vm733_vm1, %v673_v46  ;;  %v314_v46 = vld [vmem:[%s2335_s4 + $0xb8] sm:$0xff] }
 0x10c   : > { %v580_v47 = vpop.f32.mrf.mxu0  ;;  %1269 = vperm.xlu2 %1649, %v314_v46  }
 0x10d   : > { %1571 = vmatmul.msk.f32.gmra.mxu2 %vm733_vm1, %v580_v47  ;;  %v1180_v47 = vpop.permute.xlu2 %1179 }
 0x10f   : > { %1491 = vmatmul.msk.f32.gmra.mxu0 %vm331_vm0, %v252_v48  ;;  %1523 = vmatmul.msk.f32.gmra.mxu3 %vm331_vm0, %v284_v49 }
 0x112   : > { %v676_v51 = vpop.f32.mrf.mxu3 }
 0x113   : > { %1539 = vmatmul.msk.f32.gmra.mxu1 %vm733_vm1, %v676_v51 }
 0x114   : > { %v583_v52 = vpop.f32.mrf.mxu0 }
 0x115   : > { %1572 = vmatmul.msk.f32.gmra.mxu2 %vm733_vm1, %v583_v52 }
 0x117   : > { %1492 = vmatmul.msk.f32.gmra.mxu0 %vm331_vm0, %v253_v53  ;;  %1524 = vmatmul.msk.f32.gmra.mxu3 %vm331_vm0, %v285_v54  ;;  %v317_v54 = vld [vmem:[%s2335_s4 + $0xd0] sm:$0xff] }
 0x118   : > { %1284 = vperm.xlu2 %1649, %v317_v54  }
 0x11a   : > { %v679_v56 = vpop.f32.mrf.mxu3 }
 0x11b   : > { %1540 = vmatmul.msk.f32.gmra.mxu1 %vm733_vm1, %v679_v56 }
 0x11c   : > { %v586_v57 = vpop.f32.mrf.mxu0 }
 0x11d   : > { %1573 = vmatmul.msk.f32.gmra.mxu2 %vm733_vm1, %v586_v57 }
 0x11f   : > { %1493 = vmatmul.msk.f32.gmra.mxu0 %vm331_vm0, %v254_v58  ;;  %1525 = vmatmul.msk.f32.gmra.mxu3 %vm331_vm0, %v286_v59 }
 0x120   : > { %1299 = vperm.xlu2 %1649, %v320_v62  }
 0x122   : > { %v682_v63 = vpop.f32.mrf.mxu3 }
 0x123   : > { %1541 = vmatmul.msk.f32.gmra.mxu1 %vm733_vm1, %v682_v63  ;;  %v1190_v63 = vpop.permute.xlu1 %1189 }
 0x124   : > { %v589_v0 = vpop.f32.mrf.mxu0 }
 0x125   : > { %1574 = vmatmul.msk.f32.gmra.mxu2 %vm733_vm1, %v589_v0 }
 0x128   : > { %v847_v4 = vpop.f32.mrf.mxu1  ;;  %v1056_v5 = vpop.f32.mrf.mxu2 }
 0x129   : > { %v1057_v6 = vadd.f32 %v1056_v5, %v847_v4 }
 0x12a   : > { %v685_v7 = vpop.f32.mrf.mxu3 }
 0x12b   : > { %v1312_v8 = vadd.f32 %v1155_v1, %v1057_v6  ;;  %1542 = vmatmul.msk.f32.gmra.mxu1 %vm733_vm1, %v685_v7  ;;  %v1195_v6 = vpop.permute.xlu2 %1194  ;;  %v1205_v20 = vpop.permute.xlu1 %1204 }
 0x12c   : > { %v592_v9 = vpop.f32.mrf.mxu0 }
 0x12d   : > { %1345 = vst.msk [vmem:[%s2168_s14] sm:$0xff] %vm1344_vm2, %v1312_v8  ;;  %1575 = vmatmul.msk.f32.gmra.mxu2 %vm733_vm1, %v592_v9 }
 0x130   : > { %v850_v13 = vpop.f32.mrf.mxu1  ;;  %v1059_v14 = vpop.f32.mrf.mxu2 }
 0x131   : > { %v1060_v15 = vadd.f32 %v1059_v14, %v850_v13  ;;  %v1200_v13 = vpop.permute.xlu0 %1199 }
 0x132   : > { %v688_v16 = vpop.f32.mrf.mxu3 }
 0x133   : > { %v1313_v17 = vadd.f32 %v1160_v12, %v1060_v15  ;;  %1543 = vmatmul.msk.f32.gmra.mxu1 %vm733_vm1, %v688_v16 }
 0x134   : > { %v595_v18 = vpop.f32.mrf.mxu0 }
 0x135   : > { %1346 = vst.msk [vmem:[%s2168_s14 + $0x8] sm:$0xff] %vm1344_vm2, %v1313_v17  ;;  %1576 = vmatmul.msk.f32.gmra.mxu2 %vm733_vm1, %v595_v18 }
 0x138   : > { %v853_v23 = vpop.f32.mrf.mxu1  ;;  %v1062_v24 = vpop.f32.mrf.mxu2 }
 0x139   : > { %v1063_v25 = vadd.f32 %v1062_v24, %v853_v23 }
 0x13a   : > { %v691_v26 = vpop.f32.mrf.mxu3 }
 0x13b   : > { %v1314_v27 = vadd.f32 %v1165_v19, %v1063_v25  ;;  %1544 = vmatmul.msk.f32.gmra.mxu1 %vm733_vm1, %v691_v26 }
 0x13c   : > { %v598_v28 = vpop.f32.mrf.mxu0 }
 0x13d   : > { %1347 = vst.msk [vmem:[%s2168_s14 + $0x10] sm:$0xff] %vm1344_vm2, %v1314_v27  ;;  %1577 = vmatmul.msk.f32.gmra.mxu2 %vm733_vm1, %v598_v28  ;;  %v1210_v27 = vpop.permute.xlu2 %1209 }
 0x140   : > { %v856_v32 = vpop.f32.mrf.mxu1  ;;  %v1065_v33 = vpop.f32.mrf.mxu2 }
 0x141   : > { %v1066_v34 = vadd.f32 %v1065_v33, %v856_v32 }
 0x142   : > { %v694_v35 = vpop.f32.mrf.mxu3 }
 0x143   : > { %v1315_v36 = vadd.f32 %v1170_v31, %v1066_v34  ;;  %1545 = vmatmul.msk.f32.gmra.mxu1 %vm733_vm1, %v694_v35  ;;  %v1215_v34 = vpop.permute.xlu0 %1214 }
 0x144   : > { %v601_v37 = vpop.f32.mrf.mxu0 }
 0x145   : > { %1348 = vst.msk [vmem:[%s2168_s14 + $0x18] sm:$0xff] %vm1344_vm2, %v1315_v36  ;;  %1578 = vmatmul.msk.f32.gmra.mxu2 %vm733_vm1, %v601_v37 }
 0x148   : > { %v859_v40 = vpop.f32.mrf.mxu1  ;;  %v1068_v41 = vpop.f32.mrf.mxu2 }
 0x149   : > { %v1069_v42 = vadd.f32 %v1068_v41, %v859_v40  ;;  %v1220_v41 = vpop.permute.xlu1 %1219 }
 0x14a   : > { %v697_v43 = vpop.f32.mrf.mxu3 }
 0x14b   : > { %v1316_v44 = vadd.f32 %v1175_v38, %v1069_v42  ;;  %1546 = vmatmul.msk.f32.gmra.mxu1 %vm733_vm1, %v697_v43 }
 0x14c   : > { %v604_v45 = vpop.f32.mrf.mxu0 }
 0x14d   : > { %1349 = vst.msk [vmem:[%s2168_s14 + $0x20] sm:$0xff] %vm1344_vm2, %v1316_v44  ;;  %1579 = vmatmul.msk.f32.gmra.mxu2 %vm733_vm1, %v604_v45 }
 0x150   : > { %v862_v48 = vpop.f32.mrf.mxu1  ;;  %v1071_v49 = vpop.f32.mrf.mxu2 }
 0x151   : > { %v1072_v50 = vadd.f32 %v1071_v49, %v862_v48  ;;  %v1225_v48 = vpop.permute.xlu2 %1224 }
 0x152   : > { %v700_v51 = vpop.f32.mrf.mxu3 }
 0x153   : > { %v1317_v52 = vadd.f32 %v1180_v47, %v1072_v50  ;;  %1547 = vmatmul.msk.f32.gmra.mxu1 %vm733_vm1, %v700_v51 }
 0x154   : > { %v607_v53 = vpop.f32.mrf.mxu0 }
 0x155   : > { %1350 = vst.msk [vmem:[%s2168_s14 + $0x28] sm:$0xff] %vm1344_vm2, %v1317_v52  ;;  %1580 = vmatmul.msk.f32.gmra.mxu2 %vm733_vm1, %v607_v53 }
 0x158   : > { %v865_v56 = vpop.f32.mrf.mxu1  ;;  %v1074_v57 = vpop.f32.mrf.mxu2 }
 0x159   : > { %v1075_v58 = vadd.f32 %v1074_v57, %v865_v56 }
 0x15a   : > { %v703_v59 = vpop.f32.mrf.mxu3 }
 0x15b   : > { %v1318_v60 = vadd.f32 %v1185_v55, %v1075_v58  ;;  %1548 = vmatmul.msk.f32.gmra.mxu1 %vm733_vm1, %v703_v59  ;;  %v1230_v55 = vpop.permute.xlu0 %1229 }
 0x15c   : > { %v610_v61 = vpop.f32.mrf.mxu0 }
 0x15d   : > { %1351 = vst.msk [vmem:[%s2168_s14 + $0x30] sm:$0xff] %vm1344_vm2, %v1318_v60  ;;  %1581 = vmatmul.msk.f32.gmra.mxu2 %vm733_vm1, %v610_v61  ;;  %v1235_v61 = vpop.permute.xlu1 %1234 }
 0x160   : > { %v868_v0 = vpop.f32.mrf.mxu1  ;;  %v1077_v1 = vpop.f32.mrf.mxu2 }
 0x161   : > { %v1078_v2 = vadd.f32 %v1077_v1, %v868_v0 }
 0x162   : > { %v706_v3 = vpop.f32.mrf.mxu3 }
 0x163   : > { %v1319_v4 = vadd.f32 %v1190_v63, %v1078_v2  ;;  %1549 = vmatmul.msk.f32.gmra.mxu1 %vm733_vm1, %v706_v3  ;;  %v1240_v2 = vpop.permute.xlu2 %1239 }
 0x164   : > { %v613_v5 = vpop.f32.mrf.mxu0 }
 0x165   : > { %1352 = vst.msk [vmem:[%s2168_s14 + $0x38] sm:$0xff] %vm1344_vm2, %v1319_v4  ;;  %1582 = vmatmul.msk.f32.gmra.mxu2 %vm733_vm1, %v613_v5 }
 0x168   : > { %v871_v7 = vpop.f32.mrf.mxu1  ;;  %v1080_v8 = vpop.f32.mrf.mxu2 }
 0x169   : > { %v1081_v9 = vadd.f32 %v1080_v8, %v871_v7 }
 0x16a   : > { %v709_v10 = vpop.f32.mrf.mxu3 }
 0x16b   : > { %v1320_v11 = vadd.f32 %v1195_v6, %v1081_v9  ;;  %1550 = vmatmul.msk.f32.gmra.mxu1 %vm733_vm1, %v709_v10  ;;  %v1245_v10 = vpop.permute.xlu0 %1244 }
 0x16c   : > { %v616_v12 = vpop.f32.mrf.mxu0 }
 0x16d   : > { %1353 = vst.msk [vmem:[%s2168_s14 + $0x40] sm:$0xff] %vm1344_vm2, %v1320_v11  ;;  %1583 = vmatmul.msk.f32.gmra.mxu2 %vm733_vm1, %v616_v12 }
 0x170   : > { %v874_v14 = vpop.f32.mrf.mxu1  ;;  %v1083_v15 = vpop.f32.mrf.mxu2 }
 0x171   : > { %v1084_v16 = vadd.f32 %v1083_v15, %v874_v14  ;;  %v1250_v15 = vpop.permute.xlu1 %1249 }
 0x172   : > { %v712_v17 = vpop.f32.mrf.mxu3 }
 0x173   : > { %v1321_v18 = vadd.f32 %v1200_v13, %v1084_v16  ;;  %1551 = vmatmul.msk.f32.gmra.mxu1 %vm733_vm1, %v712_v17 }
 0x174   : > { %v619_v19 = vpop.f32.mrf.mxu0 }
 0x175   : > { %1354 = vst.msk [vmem:[%s2168_s14 + $0x48] sm:$0xff] %vm1344_vm2, %v1321_v18  ;;  %1584 = vmatmul.msk.f32.gmra.mxu2 %vm733_vm1, %v619_v19 }
 0x178   : > { %v877_v21 = vpop.f32.mrf.mxu1  ;;  %v1086_v22 = vpop.f32.mrf.mxu2 }
 0x179   : > { %v1087_v23 = vadd.f32 %v1086_v22, %v877_v21 }
 0x17a   : > { %v715_v24 = vpop.f32.mrf.mxu3 }
 0x17b   : > { %v1322_v25 = vadd.f32 %v1205_v20, %v1087_v23  ;;  %1552 = vmatmul.msk.f32.gmra.mxu1 %vm733_vm1, %v715_v24  ;;  %v1255_v20 = vpop.permute.xlu2 %1254 }
 0x17c   : > { %v622_v26 = vpop.f32.mrf.mxu0 }
 0x17d   : > { %1355 = vst.msk [vmem:[%s2168_s14 + $0x50] sm:$0xff] %vm1344_vm2, %v1322_v25  ;;  %1585 = vmatmul.msk.f32.gmra.mxu2 %vm733_vm1, %v622_v26  ;;  %v1260_v25 = vpop.permute.xlu0 %1259 }
 0x180   : > { %v880_v28 = vpop.f32.mrf.mxu1  ;;  %v1089_v29 = vpop.f32.mrf.mxu2 }
 0x181   : > { %v1090_v30 = vadd.f32 %v1089_v29, %v880_v28 }
 0x182   : > { %v718_v31 = vpop.f32.mrf.mxu3 }
 0x183   : > { %v1323_v32 = vadd.f32 %v1210_v27, %v1090_v30  ;;  %1553 = vmatmul.msk.f32.gmra.mxu1 %vm733_vm1, %v718_v31  ;;  %v1265_v30 = vpop.permute.xlu1 %1264 }
 0x184   : > { %v625_v33 = vpop.f32.mrf.mxu0 }
 0x185   : > { %1356 = vst.msk [vmem:[%s2168_s14 + $0x58] sm:$0xff] %vm1344_vm2, %v1323_v32  ;;  %1586 = vmatmul.msk.f32.gmra.mxu2 %vm733_vm1, %v625_v33 }
 0x188   : > { %v883_v35 = vpop.f32.mrf.mxu1  ;;  %v1092_v36 = vpop.f32.mrf.mxu2 }
 0x189   : > { %v1093_v37 = vadd.f32 %v1092_v36, %v883_v35  ;;  %v1270_v35 = vpop.permute.xlu2 %1269 }
 0x18a   : > { %v721_v38 = vpop.f32.mrf.mxu3 }
 0x18b   : > { %v1324_v39 = vadd.f32 %v1215_v34, %v1093_v37  ;;  %1554 = vmatmul.msk.f32.gmra.mxu1 %vm733_vm1, %v721_v38 }
 0x18c   : > { %v628_v40 = vpop.f32.mrf.mxu0 }
 0x18d   : > { %1357 = vst.msk [vmem:[%s2168_s14 + $0x60] sm:$0xff] %vm1344_vm2, %v1324_v39  ;;  %1587 = vmatmul.msk.f32.gmra.mxu2 %vm733_vm1, %v628_v40  ;;  %v1275_v40 = vpop.permute.xlu0 %1274 }
 0x190   : > { %v886_v42 = vpop.f32.mrf.mxu1  ;;  %v1095_v43 = vpop.f32.mrf.mxu2 }
 0x191   : > { %v1096_v44 = vadd.f32 %v1095_v43, %v886_v42 }
 0x192   : > { %v724_v45 = vpop.f32.mrf.mxu3 }
 0x193   : > { %v1325_v46 = vadd.f32 %v1220_v41, %v1096_v44  ;;  %1555 = vmatmul.msk.f32.gmra.mxu1 %vm733_vm1, %v724_v45  ;;  %v1280_v45 = vpop.permute.xlu1 %1279 }
 0x194   : > { %v631_v47 = vpop.f32.mrf.mxu0 }
 0x195   : > { %1358 = vst.msk [vmem:[%s2168_s14 + $0x68] sm:$0xff] %vm1344_vm2, %v1325_v46  ;;  %1588 = vmatmul.msk.f32.gmra.mxu2 %vm733_vm1, %v631_v47 }
 0x198   : > { %v889_v49 = vpop.f32.mrf.mxu1  ;;  %v1098_v50 = vpop.f32.mrf.mxu2 }
 0x199   : > { %v1099_v51 = vadd.f32 %v1098_v50, %v889_v49  ;;  %v1285_v50 = vpop.permute.xlu2 %1284 }
 0x19a   : > { %v727_v52 = vpop.f32.mrf.mxu3 }
 0x19b   : > { %v1326_v53 = vadd.f32 %v1225_v48, %v1099_v51  ;;  %1556 = vmatmul.msk.f32.gmra.mxu1 %vm733_vm1, %v727_v52 }
 0x19c   : > { %v634_v54 = vpop.f32.mrf.mxu0 }
 0x19d   : > { %1359 = vst.msk [vmem:[%s2168_s14 + $0x70] sm:$0xff] %vm1344_vm2, %v1326_v53  ;;  %1589 = vmatmul.msk.f32.gmra.mxu2 %vm733_vm1, %v634_v54 }
 0x1a0   : > { %v892_v56 = vpop.f32.mrf.mxu1  ;;  %v1101_v57 = vpop.f32.mrf.mxu2 }
 0x1a1   : > { %v1102_v58 = vadd.f32 %v1101_v57, %v892_v56 }
 0x1a2   : > { %v730_v59 = vpop.f32.mrf.mxu3 }
 0x1a3   : > { %v1327_v60 = vadd.f32 %v1230_v55, %v1102_v58  ;;  %1557 = vmatmul.msk.f32.gmra.mxu1 %vm733_vm1, %v730_v59  ;;  %v1290_v55 = vpop.permute.xlu0 %1289 }
 0x1a5   : > { %1360 = vst.msk [vmem:[%s2168_s14 + $0x78] sm:$0xff] %vm1344_vm2, %v1327_v60  ;;  %v1295_v60 = vpop.permute.xlu1 %1294 }
 0x1a8   : > { %v895_v62 = vpop.f32.mrf.mxu1  ;;  %v1104_v63 = vpop.f32.mrf.mxu2 }
 0x1a9   : > { %v1105_v0 = vadd.f32 %v1104_v63, %v895_v62 }
 0x1ab   : > { %v1328_v1 = vadd.f32 %v1235_v61, %v1105_v0 }
 0x1ad   : > { %1361 = vst.msk [vmem:[%s2168_s14 + $0x80] sm:$0xff] %vm1344_vm2, %v1328_v1  ;;  %v1300_v1 = vpop.permute.xlu2 %1299 }
 0x1b0   : > { %v898_v3 = vpop.f32.mrf.mxu1  ;;  %v1107_v4 = vpop.f32.mrf.mxu2 }
 0x1b1   : > { %v1108_v5 = vadd.f32 %v1107_v4, %v898_v3 }
 0x1b3   : > { %v1329_v6 = vadd.f32 %v1240_v2, %v1108_v5 }
 0x1b5   : > { %1362 = vst.msk [vmem:[%s2168_s14 + $0x88] sm:$0xff] %vm1344_vm2, %v1329_v6  ;;  %v1305_v6 = vpop.permute.xlu0 %1304 }
 0x1b8   : > { %v901_v7 = vpop.f32.mrf.mxu1  ;;  %v1110_v8 = vpop.f32.mrf.mxu2 }
 0x1b9   : > { %v1111_v9 = vadd.f32 %v1110_v8, %v901_v7 }
 0x1bb   : > { %v1330_v11 = vadd.f32 %v1245_v10, %v1111_v9 }
 0x1bd   : > { %1363 = vst.msk [vmem:[%s2168_s14 + $0x90] sm:$0xff] %vm1344_vm2, %v1330_v11  ;;  %v1310_v11 = vpop.permute.xlu1 %1309 }
 0x1c0   : > { %v904_v12 = vpop.f32.mrf.mxu1  ;;  %v1113_v13 = vpop.f32.mrf.mxu2 }
 0x1c1   : > { %v1114_v14 = vadd.f32 %v1113_v13, %v904_v12 }
 0x1c3   : > { %v1331_v16 = vadd.f32 %v1250_v15, %v1114_v14 }
 0x1c5   : > { %1364 = vst.msk [vmem:[%s2168_s14 + $0x98] sm:$0xff] %vm1344_vm2, %v1331_v16 }
 0x1c8   : > { %v907_v17 = vpop.f32.mrf.mxu1  ;;  %v1116_v18 = vpop.f32.mrf.mxu2 }
 0x1c9   : > { %v1117_v19 = vadd.f32 %v1116_v18, %v907_v17 }
 0x1cb   : > { %v1332_v21 = vadd.f32 %v1255_v20, %v1117_v19 }
 0x1cd   : > { %1365 = vst.msk [vmem:[%s2168_s14 + $0xa0] sm:$0xff] %vm1344_vm2, %v1332_v21 }
 0x1d0   : > { %v910_v22 = vpop.f32.mrf.mxu1  ;;  %v1119_v23 = vpop.f32.mrf.mxu2 }
 0x1d1   : > { %v1120_v24 = vadd.f32 %v1119_v23, %v910_v22 }
 0x1d3   : > { %v1333_v26 = vadd.f32 %v1260_v25, %v1120_v24 }
 0x1d5   : > { %1366 = vst.msk [vmem:[%s2168_s14 + $0xa8] sm:$0xff] %vm1344_vm2, %v1333_v26 }
 0x1d8   : > { %v913_v27 = vpop.f32.mrf.mxu1  ;;  %v1122_v28 = vpop.f32.mrf.mxu2 }
 0x1d9   : > { %v1123_v29 = vadd.f32 %v1122_v28, %v913_v27 }
 0x1db   : > { %v1334_v31 = vadd.f32 %v1265_v30, %v1123_v29 }
 0x1dd   : > { %1367 = vst.msk [vmem:[%s2168_s14 + $0xb0] sm:$0xff] %vm1344_vm2, %v1334_v31 }
 0x1e0   : > { %v916_v32 = vpop.f32.mrf.mxu1  ;;  %v1125_v33 = vpop.f32.mrf.mxu2 }
 0x1e1   : > { %v1126_v34 = vadd.f32 %v1125_v33, %v916_v32 }
 0x1e3   : > { %v1335_v36 = vadd.f32 %v1270_v35, %v1126_v34 }
 0x1e5   : > { %1368 = vst.msk [vmem:[%s2168_s14 + $0xb8] sm:$0xff] %vm1344_vm2, %v1335_v36 }
 0x1e8   : > { %v919_v37 = vpop.f32.mrf.mxu1  ;;  %v1128_v38 = vpop.f32.mrf.mxu2 }
 0x1e9   : > { %v1129_v39 = vadd.f32 %v1128_v38, %v919_v37 }
 0x1eb   : > { %v1336_v41 = vadd.f32 %v1275_v40, %v1129_v39 }
 0x1ed   : > { %1369 = vst.msk [vmem:[%s2168_s14 + $0xc0] sm:$0xff] %vm1344_vm2, %v1336_v41 }
 0x1f0   : > { %v922_v42 = vpop.f32.mrf.mxu1  ;;  %v1131_v43 = vpop.f32.mrf.mxu2 }
 0x1f1   : > { %v1132_v44 = vadd.f32 %v1131_v43, %v922_v42 }
 0x1f3   : > { %v1337_v46 = vadd.f32 %v1280_v45, %v1132_v44 }
 0x1f5   : > { %1370 = vst.msk [vmem:[%s2168_s14 + $0xc8] sm:$0xff] %vm1344_vm2, %v1337_v46 }
 0x1f8   : > { %v925_v47 = vpop.f32.mrf.mxu1  ;;  %v1134_v48 = vpop.f32.mrf.mxu2 }
 0x1f9   : > { %v1135_v49 = vadd.f32 %v1134_v48, %v925_v47 }
 0x1fb   : > { %v1338_v51 = vadd.f32 %v1285_v50, %v1135_v49 }
 0x1fd   : > { %1371 = vst.msk [vmem:[%s2168_s14 + $0xd0] sm:$0xff] %vm1344_vm2, %v1338_v51 }
 0x200   : > { %v928_v52 = vpop.f32.mrf.mxu1  ;;  %v1137_v53 = vpop.f32.mrf.mxu2 }
 0x201   : > { %v1138_v54 = vadd.f32 %v1137_v53, %v928_v52 }
 0x203   : > { %v1339_v56 = vadd.f32 %v1290_v55, %v1138_v54 }
 0x205   : > { %1372 = vst.msk [vmem:[%s2168_s14 + $0xd8] sm:$0xff] %vm1344_vm2, %v1339_v56 }
 0x208   : > { %v931_v57 = vpop.f32.mrf.mxu1  ;;  %v1140_v58 = vpop.f32.mrf.mxu2 }
 0x209   : > { %v1141_v59 = vadd.f32 %v1140_v58, %v931_v57 }
 0x20b   : > { %v1340_v61 = vadd.f32 %v1295_v60, %v1141_v59 }
 0x20d   : > { %1373 = vst.msk [vmem:[%s2168_s14 + $0xe0] sm:$0xff] %vm1344_vm2, %v1340_v61 }
 0x210   : > { %v934_v62 = vpop.f32.mrf.mxu1  ;;  %v1143_v63 = vpop.f32.mrf.mxu2 }
 0x211   : > { %v1144_v0 = vadd.f32 %v1143_v63, %v934_v62 }
 0x213   : > { %v1341_v2 = vadd.f32 %v1300_v1, %v1144_v0 }
 0x215   : > { %1374 = vst.msk [vmem:[%s2168_s14 + $0xe8] sm:$0xff] %vm1344_vm2, %v1341_v2 }
 0x218   : > { %v937_v3 = vpop.f32.mrf.mxu1  ;;  %v1146_v4 = vpop.f32.mrf.mxu2 }
 0x219   : > { %v1147_v5 = vadd.f32 %v1146_v4, %v937_v3 }
 0x21b   : > { %v1342_v7 = vadd.f32 %v1305_v6, %v1147_v5 }
 0x21d   : > { %1375 = vst.msk [vmem:[%s2168_s14 + $0xf0] sm:$0xff] %vm1344_vm2, %v1342_v7 }
 0x220   : > { %v940_v8 = vpop.f32.mrf.mxu1  ;;  %v1149_v9 = vpop.f32.mrf.mxu2 }
 0x221   : > { %v1150_v10 = vadd.f32 %v1149_v9, %v940_v8 }
 0x223   : > { %v1343_v12 = vadd.f32 %v1310_v11, %v1150_v10 }
 0x225   : > { %1376 = vst.msk [vmem:[%s2168_s14 + $0xf8] sm:$0xff] %vm1344_vm2, %v1343_v12 }
 0x226   : > { %1677 = shalt.err (!%p1674_p3)
}
 0x227   : > { %s1715_s8 = smov 128   ;;  %s1716_s14 = smov 8  }
 0x228   : > { %1605 = dma.vmem_to_hbm [thread:$0]  (%p1785_p5), %s1391_s12, 4096, %s1393_s13, %s1378_s22, %s1715_s8, %s1715_s8, %s1716_s14  }
 0x229 PF: > { %p1611_p4 = scmp.ge.s32.totalorder %s1712_s21, 2  ;;  %s1407_s6 = sand.u32 1, %s1700_s18  }
 0x22a   : > { %s1408_s7 = scalar_lea.sflag [#allocation3], %s1407_s6 }
 0x22b   : > { %p1608_p7 = pnand %p1611_p4, %p1789_p6 }
 0x22d   : > { %p1609_p8 = pneg %p1608_p7 }
 0x22f   : > { %1695 = dma.done.wait (%p1609_p8), %s1408_s7, 4096  }
 0x230   : > { %1697 = vsyncadd (%p1609_p8), %s1408_s7, 4294963200  ;;  %p15_p9 = scmp.ge.s32.totalorder %s1772_s24, 4   ;;  %s2339_s18 = smov %s1704_s19 }
 0x231   : > { %s2340_s19 = smov %s1708_s20  ;;  %s2341_s20 = smov %s1783_s27 }
 0x232   : > { %s2342_s21 = smov %s1772_s24  ;;  %17 = sbr.rel (!%p15_p9) target bundleno = 3 (0x3), region = 75 }
 0x237   :  { %1414 = vsyncpa [#allocation3], 1 }
 0x238   :  { %1416 = vsyncpa [#allocation3 + $0x1], 1 }

</bundles_post_ra>
